<compile_context>
chip_gen: v6e
topology: v6e:2x2x1
jax: 0.10.0
libtpu: 0.0.40
codegen_flags: <defaults>
</compile_context>

<pallas_src>
import functools

import jax
import jax.numpy as jnp
from jax.experimental import pallas as pl
from jax.experimental.pallas import tpu as pltpu

HIDDEN1 = 50
HIDDEN2 = 200
H1_PAD = 128   # lane-aligned fc1 width (zero padded)
H2_PAD = 256   # lane-aligned fc2 width (zero padded)
LANE = 128


def _round_up(x, m):
    return (x + m - 1) // m * m


def _choose_block_b(B):
    """Batch-tile heuristic.

    - B <= 256: single grid step (full-dim block, no alignment needed).
    - B  > 256: at least two grid steps so the 'parallel' batch axis can be
      sharded across v7x's two TensorCores; rounded to a sublane (8) multiple
      and capped at 2048 rows/step to keep double-buffering headroom inside
      v7x's 64 MiB VMEM (v5e/v6e have 128 MiB, so this is conservative there).
    """
    if B <= 256:
        return B
    half = _round_up(-(-B // 2), 8)
    return min(half, 2048)


def _mlp_kernel(x_ref, w1_ref, b1_ref, w2_ref, b2_ref, w3_ref, b3_ref, o_ref):
    # Fused 3-layer MLP on one batch tile, entirely in VMEM; f32 accumulation.
    # Matmul operands may be bf16 (x/weights); biases, ReLU and output are f32.
    x = x_ref[...]
    h1 = jnp.dot(x, w1_ref[...], preferred_element_type=jnp.float32) + b1_ref[...]
    h1 = jnp.maximum(h1, 0.0)
    h2 = jnp.dot(h1.astype(w2_ref.dtype), w2_ref[...],
                 preferred_element_type=jnp.float32) + b2_ref[...]
    h2 = jnp.maximum(h2, 0.0)
    y = jnp.dot(h2.astype(w3_ref.dtype), w3_ref[...],
                preferred_element_type=jnp.float32) + b3_ref[...]
    o_ref[...] = y.astype(o_ref.dtype)


def pad_params(w1, b1, w2, b2, w3, b3, *, matmul_dtype=jnp.float32):
    """One-time (cached) zero padding of the weights to lane-aligned widths.

    Weights are stored (in, out); biases (1, out). Zero padding is
    mathematically inert (ReLU(0)=0; zero rows/cols contribute nothing).
    Weight matrices are stored in `matmul_dtype` (f32 or bf16); biases stay f32.
    """
    n_output = w3.shape[1]
    out_pad = _round_up(n_output, LANE)
    f32 = jnp.float32
    w1_p = jnp.pad(w1.astype(f32), ((0, 0), (0, H1_PAD - HIDDEN1))).astype(matmul_dtype)
    b1_p = jnp.pad(b1.astype(f32).reshape(1, -1), ((0, 0), (0, H1_PAD - HIDDEN1)))
    w2_p = jnp.pad(w2.astype(f32),
                   ((0, H1_PAD - HIDDEN1), (0, H2_PAD - HIDDEN2))).astype(matmul_dtype)
    b2_p = jnp.pad(b2.astype(f32).reshape(1, -1), ((0, 0), (0, H2_PAD - HIDDEN2)))
    w3_p = jnp.pad(w3.astype(f32),
                   ((0, H2_PAD - HIDDEN2), (0, out_pad - n_output))).astype(matmul_dtype)
    b3_p = jnp.pad(b3.astype(f32).reshape(1, -1), ((0, 0), (0, out_pad - n_output)))
    return (w1_p, b1_p, w2_p, b2_p, w3_p, b3_p)


@functools.partial(jax.jit, static_argnames=("n_output", "block_b"))
def mlp_forward(x, padded_params, *, n_output, block_b=None):
    """x: (B, n_input); padded_params from pad_params(); returns (B, n_output)."""
    w1_p, b1_p, w2_p, b2_p, w3_p, b3_p = padded_params
    B, n_input = x.shape
    out_pad = w3_p.shape[1]
    matmul_dtype = w1_p.dtype

    if block_b is None:
        block_b = _choose_block_b(B)
    grid = (pl.cdiv(B, block_b),)

    # Only the dot operand x is cast; no batch padding (Pallas clips the
    # partial final block; OOB rows only feed discarded output rows).
    x_p = x.astype(matmul_dtype)

    flops = 2 * B * (n_input * H1_PAD + H1_PAD * H2_PAD + H2_PAD * out_pad)
    w_bytes = sum(int(a.size) * a.dtype.itemsize
                  for a in (w1_p, b1_p, w2_p, b2_p, w3_p, b3_p))
    bytes_accessed = (B * n_input * x_p.dtype.itemsize
                      + B * out_pad * 4
                      + w_bytes)

    # Per-step VMEM footprint: double-buffered x/out tiles, weights, plus
    # f32 intermediates. Clamp to [32 MiB, 64 MiB] (v7x VMEM is 64 MiB/TC).
    vmem_bytes = (2 * block_b * n_input * x_p.dtype.itemsize
                  + 2 * block_b * out_pad * 4
                  + block_b * (H1_PAD + H2_PAD) * 4
                  + 2 * w_bytes)
    vmem_limit = int(min(max(2 * vmem_bytes, 32 * 1024 * 1024), 64 * 1024 * 1024))

    out_padded = pl.pallas_call(
        _mlp_kernel,
        out_shape=jax.ShapeDtypeStruct((B, out_pad), jnp.float32),
        grid_spec=pltpu.PrefetchScalarGridSpec(
            num_scalar_prefetch=0,
            grid=grid,
            in_specs=[
                pl.BlockSpec((block_b, n_input), lambda i: (i, 0)),
                pl.BlockSpec((n_input, H1_PAD), lambda i: (0, 0)),
                pl.BlockSpec((1, H1_PAD), lambda i: (0, 0)),
                pl.BlockSpec((H1_PAD, H2_PAD), lambda i: (0, 0)),
                pl.BlockSpec((1, H2_PAD), lambda i: (0, 0)),
                pl.BlockSpec((H2_PAD, out_pad), lambda i: (0, 0)),
                pl.BlockSpec((1, out_pad), lambda i: (0, 0)),
            ],
            out_specs=pl.BlockSpec((block_b, out_pad), lambda i: (i, 0)),
        ),
        compiler_params=pltpu.CompilerParams(
            dimension_semantics=("parallel",),
            vmem_limit_bytes=vmem_limit,
        ),
        cost_estimate=pl.CostEstimate(
            flops=flops, transcendentals=0, bytes_accessed=bytes_accessed),
    )(x_p, w1_p, b1_p, w2_p, b2_p, w3_p, b3_p)

    # Column slice only (no row slice — output rows already equal B). Callers
    # that can consume the 128-lane-padded output may skip this.
    return out_padded[:, :n_output]


def init_params(key, n_input, n_output):
    """Deterministic init mirroring nn.Linear shapes.

    PyTorch stores Linear weight as (out, in); we store the transpose (in, out)
    so the kernel computes x @ W + b. Uniform(-1/sqrt(fan_in), 1/sqrt(fan_in)),
    same scheme as PyTorch's default Linear init.
    """
    ks = jax.random.split(key, 6)

    def uniform(k, shape, fan_in):
        bound = 1.0 / jnp.sqrt(jnp.float32(fan_in))
        return jax.random.uniform(k, shape, jnp.float32, -bound, bound)

    w1 = uniform(ks[0], (n_input, HIDDEN1), n_input)
    b1 = uniform(ks[1], (1, HIDDEN1), n_input)
    w2 = uniform(ks[2], (HIDDEN1, HIDDEN2), HIDDEN1)
    b2 = uniform(ks[3], (1, HIDDEN2), HIDDEN1)
    w3 = uniform(ks[4], (HIDDEN2, n_output), HIDDEN2)
    b3 = uniform(ks[5], (1, n_output), HIDDEN2)
    return w1, b1, w2, b2, w3, b3


def mlp_reference(x, w1, b1, w2, b2, w3, b3):
    h1 = jnp.maximum(x @ w1 + b1, 0.0)
    h2 = jnp.maximum(h1 @ w2 + b2, 0.0)
    return h2 @ w3 + b3


if __name__ == "__main__":
    key = jax.random.PRNGKey(0)
    k_x, k_p, k_x2, k_x3 = jax.random.split(key, 4)

    B = 16          # batch
    n_input = 32    # input feature dim
    n_output = 16   # output feature dim

    params = init_params(k_p, n_input, n_output)
    padded_f32 = pad_params(*params)                               # cached once
    padded_bf16 = pad_params(*params, matmul_dtype=jnp.bfloat16)   # cached once

    # Check 1: small batch, single grid step, f32 path.
    x = jax.random.normal(k_x, (B, n_input), dtype=jnp.float32)
    out = jax.block_until_ready(mlp_forward(x, padded_f32, n_output=n_output))
    ref = mlp_reference(x, *params)
    assert out.shape == (B, n_output)
    assert jnp.allclose(out, ref, atol=1e-4, rtol=1e-4), "mismatch vs reference"

    # Check 2: batch not a multiple of 8 (full-dim batch block).
    B2 = 20
    x2 = jax.random.normal(k_x2, (B2, n_input), dtype=jnp.float32)
    out2 = jax.block_until_ready(mlp_forward(x2, padded_f32, n_output=n_output))
    ref2 = mlp_reference(x2, *params)
    assert out2.shape == (B2, n_output)
    assert jnp.allclose(out2, ref2, atol=1e-4, rtol=1e-4), "mismatch (B=20)"

    # Check 3: multi-step grid with a clipped partial final block (B=300 ->
    # block_b=152, grid=(2,)), exercising the no-batch-pad path.
    B3 = 300
    x3 = jax.random.normal(k_x3, (B3, n_input), dtype=jnp.float32)
    out3 = jax.block_until_ready(mlp_forward(x3, padded_f32, n_output=n_output))
    ref3 = mlp_reference(x3, *params)
    assert out3.shape == (B3, n_output)
    assert jnp.allclose(out3, ref3, atol=1e-4, rtol=1e-4), "mismatch (B=300)"

    # Check 4: bf16 matmul operands with f32 accumulation (looser tolerance).
    out_bf16 = jax.block_until_ready(mlp_forward(x, padded_bf16, n_output=n_output))
    assert out_bf16.shape == (B, n_output)
    assert jnp.allclose(out_bf16, ref, atol=5e-2, rtol=5e-2), "mismatch (bf16)"

    print("KERNEL_OK")
</pallas_src>

<mosaic_0001>
module attributes {stable_mosaic.version = 11 : i64} {
  func.func @_mlp_kernel(%arg0: i32, %arg1: memref<16x32xf32, #tpu.memory_space<vmem>>, %arg2: memref<32x128xf32, #tpu.memory_space<vmem>>, %arg3: memref<1x128xf32, #tpu.memory_space<vmem>>, %arg4: memref<128x256xf32, #tpu.memory_space<vmem>>, %arg5: memref<1x256xf32, #tpu.memory_space<vmem>>, %arg6: memref<256x128xf32, #tpu.memory_space<vmem>>, %arg7: memref<1x128xf32, #tpu.memory_space<vmem>>, %arg8: memref<16x128xf32, #tpu.memory_space<vmem>>) attributes {dimension_semantics = [#tpu.dimension_semantics<parallel>], iteration_bounds = array<i64: 1>, scalar_prefetch = 0 : i64, scratch_operands = 0 : i64, tpu.core_type = #tpu.core_type<tc>, window_params = [{transform_indices = @transform_0, window_bounds = array<i64: 16, 32>}, {pipeline_mode = #tpu.pipeline_mode<synchronous>, transform_indices = @transform_1, window_bounds = array<i64: 32, 128>}, {pipeline_mode = #tpu.pipeline_mode<synchronous>, transform_indices = @transform_2, window_bounds = array<i64: 1, 128>}, {pipeline_mode = #tpu.pipeline_mode<synchronous>, transform_indices = @transform_3, window_bounds = array<i64: 128, 256>}, {pipeline_mode = #tpu.pipeline_mode<synchronous>, transform_indices = @transform_4, window_bounds = array<i64: 1, 256>}, {pipeline_mode = #tpu.pipeline_mode<synchronous>, transform_indices = @transform_5, window_bounds = array<i64: 256, 128>}, {pipeline_mode = #tpu.pipeline_mode<synchronous>, transform_indices = @transform_6, window_bounds = array<i64: 1, 128>}, {transform_indices = @transform_7, window_bounds = array<i64: 16, 128>}]} {
    %c0 = arith.constant 0 : index
    %c0_0 = arith.constant 0 : index
    %0 = vector.load %arg1[%c0, %c0_0] : memref<16x32xf32, #tpu.memory_space<vmem>>, vector<16x32xf32>
    %c0_1 = arith.constant 0 : index
    %c0_2 = arith.constant 0 : index
    %1 = vector.load %arg2[%c0_1, %c0_2] : memref<32x128xf32, #tpu.memory_space<vmem>>, vector<32x128xf32>
    %cst = arith.constant dense<0.000000e+00> : vector<16x128xf32>
    %2 = tpu.matmul %0, %1, %cst {dimension_numbers = #tpu.dot_dimension_numbers<[1], [0], [0], [1], [0, 0, 1, 1], [], []>} : vector<16x32xf32>, vector<32x128xf32>, vector<16x128xf32> -> vector<16x128xf32>
    %c0_3 = arith.constant 0 : index
    %c0_4 = arith.constant 0 : index
    %3 = vector.load %arg3[%c0_3, %c0_4] : memref<1x128xf32, #tpu.memory_space<vmem>>, vector<1x128xf32>
    %4 = vector.broadcast %3 : vector<1x128xf32> to vector<16x128xf32>
    %5 = arith.addf %2, %4 : vector<16x128xf32>
    %cst_5 = arith.constant 0.000000e+00 : f32
    %6 = vector.broadcast %cst_5 : f32 to vector<16x128xf32>
    %7 = arith.maximumf %5, %6 : vector<16x128xf32>
    %c0_6 = arith.constant 0 : index
    %c0_7 = arith.constant 0 : index
    %8 = vector.load %arg4[%c0_6, %c0_7] : memref<128x256xf32, #tpu.memory_space<vmem>>, vector<128x256xf32>
    %cst_8 = arith.constant dense<0.000000e+00> : vector<16x256xf32>
    %9 = tpu.matmul %7, %8, %cst_8 {dimension_numbers = #tpu.dot_dimension_numbers<[1], [0], [0], [1], [0, 0, 1, 1], [], []>} : vector<16x128xf32>, vector<128x256xf32>, vector<16x256xf32> -> vector<16x256xf32>
    %c0_9 = arith.constant 0 : index
    %c0_10 = arith.constant 0 : index
    %10 = vector.load %arg5[%c0_9, %c0_10] : memref<1x256xf32, #tpu.memory_space<vmem>>, vector<1x256xf32>
    %11 = vector.broadcast %10 : vector<1x256xf32> to vector<16x256xf32>
    %12 = arith.addf %9, %11 : vector<16x256xf32>
    %cst_11 = arith.constant 0.000000e+00 : f32
    %13 = vector.broadcast %cst_11 : f32 to vector<16x256xf32>
    %14 = arith.maximumf %12, %13 : vector<16x256xf32>
    %c0_12 = arith.constant 0 : index
    %c0_13 = arith.constant 0 : index
    %15 = vector.load %arg6[%c0_12, %c0_13] : memref<256x128xf32, #tpu.memory_space<vmem>>, vector<256x128xf32>
    %cst_14 = arith.constant dense<0.000000e+00> : vector<16x128xf32>
    %16 = tpu.matmul %14, %15, %cst_14 {dimension_numbers = #tpu.dot_dimension_numbers<[1], [0], [0], [1], [0, 0, 1, 1], [], []>} : vector<16x256xf32>, vector<256x128xf32>, vector<16x128xf32> -> vector<16x128xf32>
    %c0_15 = arith.constant 0 : index
    %c0_16 = arith.constant 0 : index
    %17 = vector.load %arg7[%c0_15, %c0_16] : memref<1x128xf32, #tpu.memory_space<vmem>>, vector<1x128xf32>
    %18 = vector.broadcast %17 : vector<1x128xf32> to vector<16x128xf32>
    %19 = arith.addf %16, %18 : vector<16x128xf32>
    %c0_17 = arith.constant 0 : index
    %c0_18 = arith.constant 0 : index
    %20 = vector.load %arg8[%c0_17, %c0_18] : memref<16x128xf32, #tpu.memory_space<vmem>>, vector<16x128xf32>
    tpu.vector_store %arg8[%c0_17, %c0_18], %19 {strides = array<i32>} : memref<16x128xf32, #tpu.memory_space<vmem>>, vector<16x128xf32>,
    return
  }
  func.func @transform_0(%arg0: i32) -> (i32, i32) {
    %c0_i32 = arith.constant 0 : i32
    %c0_i32_0 = arith.constant 0 : i32
    return %arg0, %c0_i32 : i32, i32
  }
  func.func @transform_1(%arg0: i32) -> (i32, i32) {
    %c0_i32 = arith.constant 0 : i32
    %c0_i32_0 = arith.constant 0 : i32
    %c0_i32_1 = arith.constant 0 : i32
    return %c0_i32, %c0_i32_0 : i32, i32
  }
  func.func @transform_2(%arg0: i32) -> (i32, i32) {
    %c0_i32 = arith.constant 0 : i32
    %c0_i32_0 = arith.constant 0 : i32
    %c0_i32_1 = arith.constant 0 : i32
    return %c0_i32, %c0_i32_0 : i32, i32
  }
  func.func @transform_3(%arg0: i32) -> (i32, i32) {
    %c0_i32 = arith.constant 0 : i32
    %c0_i32_0 = arith.constant 0 : i32
    %c0_i32_1 = arith.constant 0 : i32
    return %c0_i32, %c0_i32_0 : i32, i32
  }
  func.func @transform_4(%arg0: i32) -> (i32, i32) {
    %c0_i32 = arith.constant 0 : i32
    %c0_i32_0 = arith.constant 0 : i32
    %c0_i32_1 = arith.constant 0 : i32
    return %c0_i32, %c0_i32_0 : i32, i32
  }
  func.func @transform_5(%arg0: i32) -> (i32, i32) {
    %c0_i32 = arith.constant 0 : i32
    %c0_i32_0 = arith.constant 0 : i32
    %c0_i32_1 = arith.constant 0 : i32
    return %c0_i32, %c0_i32_0 : i32, i32
  }
  func.func @transform_6(%arg0: i32) -> (i32, i32) {
    %c0_i32 = arith.constant 0 : i32
    %c0_i32_0 = arith.constant 0 : i32
    %c0_i32_1 = arith.constant 0 : i32
    return %c0_i32, %c0_i32_0 : i32, i32
  }
  func.func @transform_7(%arg0: i32) -> (i32, i32) {
    %c0_i32 = arith.constant 0 : i32
    %c0_i32_0 = arith.constant 0 : i32
    return %arg0, %c0_i32 : i32, i32
  }
}

</mosaic_0001>

<bundles_post_ra>
// kernel: mlp_forward.1
= control target key start
LH: loop header
LB: loop body
LE: loop exit
PB: predicated region body
PF: predicated region fallthrough
CT: control target
= control target key end

     0   :  { %12 = vsyncpa [#allocation3], 0  ;;  %s704_s0 = inlined_call_operand.hbm [shape: f32[16,32], index: 0, kind: input, shape index: {}]   ;;  %s705_s1 = inlined_call_operand.hbm [shape: f32[32,128], index: 1, kind: input, shape index: {}]   ;;  %s706_s2 = inlined_call_operand.vmem [shape: f32[1,128], index: 2, kind: input, shape index: {}]   ;;  %s707_s3 = inlined_call_operand.hbm [shape: f32[128,256], index: 3, kind: input, shape index: {}]   ;;  %s708_s4 = inlined_call_operand.vmem [shape: f32[1,256], index: 4, kind: input, shape index: {}]   ;;  %s709_s5 = inlined_call_operand.hbm [shape: f32[256,128], index: 5, kind: input, shape index: {}]   ;;  %s710_s6 = inlined_call_operand.vmem [shape: f32[1,128], index: 6, kind: input, shape index: {}]   ;;  %s711_s7 = inlined_call_operand.hbm [shape: f32[16,128], index: 7, kind: output, shape index: {}]  }
   0x1   :  { %13 = vsyncpa [#allocation6], 0 }
   0x2   :  { %14 = vsyncpa [#allocation9], 0 }
   0x3   :  { %15 = vsyncpa [#allocation4], 0  ;;  %s616_s24 = smov [#allocation5]   ;;  %s617_s26 = smov [#allocation2]  }
   0x4   :  { %s33_s25 = sshll.u32 %s616_s24, 4  ;;  %s21_s27 = sshll.u32 %s617_s26, 4  ;;  %s34_s25 = int_to_ptr.vmem [resolvable:$true] %s33_s25  ;;  %s22_s27 = int_to_ptr.vmem [resolvable:$true] %s21_s27 }
   0x5   :  { %s516_s28 = scalar_lea.vmem %s34_s25, 512  ;;  %p521_p1 = scmp.lt.s32.totalorder %s34_s25, %s34_s25 }
   0x6   :  { %p517_p0 = scmp.ne.s32.totalorder %s34_s25, %s516_s28  ;;  %p522_p2 = scmp.lt.s32.totalorder %s516_s28, %s516_s28 }
   0x8   :  { %p523_p3 = por %p522_p2, %p521_p1 }
   0xa   :  { %p524_p4 = pnand %p523_p3, %p517_p0 }
   0xc   :  { %527 = shalt.err (!%p524_p4)
}
   0xd   :  { %s618_s29 = smov 128   ;;  %s619_s30 = smov 8  }
   0xe   :  { %39 = dma.hbm_to_vmem [thread:$0]  %s705_s1, 512, %s34_s25, [#allocation6], %s618_s29, %s618_s29, %s619_s30  }
   0xf   :  { %s536_s10 = scalar_lea.vmem %s22_s27, 256  ;;  %p541_p6 = scmp.lt.s32.totalorder %s22_s27, %s22_s27 }
  0x10   :  { %p537_p5 = scmp.ne.s32.totalorder %s22_s27, %s536_s10  ;;  %p542_p7 = scmp.lt.s32.totalorder %s536_s10, %s536_s10 }
  0x12   :  { %p543_p8 = por %p542_p7, %p541_p6 }
  0x14   :  { %p544_p9 = pnand %p543_p8, %p537_p5 }
  0x16   :  { %547 = shalt.err (!%p544_p9)
}
  0x17   :  { %27 = dma.hbm_to_vmem [thread:$0]  %s704_s0, 256, %s22_s27, [#allocation3], %s618_s29, %s618_s29, %s619_s30  }
  0x18   :  { %s620_s13 = smov [#allocation7]  }
  0x19   :  { %s47_s14 = sshll.u32 %s620_s13, 4  ;;  %s48_s14 = int_to_ptr.vmem [resolvable:$true] %s47_s14 }
  0x1a   :  { %s556_s15 = scalar_lea.vmem %s48_s14, 4096  ;;  %p561_p11 = scmp.lt.s32.totalorder %s48_s14, %s48_s14 }
  0x1b   :  { %p557_p10 = scmp.ne.s32.totalorder %s48_s14, %s556_s15  ;;  %p562_p12 = scmp.lt.s32.totalorder %s556_s15, %s556_s15 }
  0x1d   :  { %p563_p13 = por %p562_p12, %p561_p11 }
  0x1f   :  { %p564_p0 = pnand %p563_p13, %p557_p10 }
  0x21   :  { %567 = shalt.err (!%p564_p0)
}
  0x22   :  { %s621_s1 = smov 256   ;;  %s622_s16 = smov 16  }
  0x23   :  { %53 = dma.hbm_to_vmem [thread:$0]  %s707_s3, 4096, %s48_s14, [#allocation6], %s621_s1, %s621_s1, %s622_s16  }
  0x24   :  { %s623_s19 = smov [#allocation8]  }
  0x25   :  { %s61_s20 = sshll.u32 %s623_s19, 4  ;;  %s62_s20 = int_to_ptr.vmem [resolvable:$true] %s61_s20 }
  0x26   :  { %s576_s0 = scalar_lea.vmem %s62_s20, 4096  ;;  %p581_p2 = scmp.lt.s32.totalorder %s62_s20, %s62_s20 }
  0x27   :  { %p577_p1 = scmp.ne.s32.totalorder %s62_s20, %s576_s0  ;;  %p582_p3 = scmp.lt.s32.totalorder %s576_s0, %s576_s0 }
  0x29   :  { %p583_p4 = por %p582_p3, %p581_p2 }
  0x2b   :  { %p584_p5 = pnand %p583_p4, %p577_p1 }
  0x2d   :  { %587 = shalt.err (!%p584_p5)
}
  0x2e   :  { %67 = dma.hbm_to_vmem [thread:$0]  %s709_s5, 4096, %s62_s20, [#allocation9], %s618_s29, %s618_s29, %s619_s30  }
  0x2f   :  { %608 = dma.done.wait [#allocation3], 256  }
  0x30   :  { %609 = vsyncadd [#allocation3], 4294967040 }
  0x31   :  { %610 = dma.done.wait [#allocation6], 4608  }
  0x32   :  { %611 = vsyncadd [#allocation6], 4294962688 }
  0x33   :  { %612 = dma.done.wait [#allocation9], 4096  }
  0x34   :  { %613 = vsyncadd [#allocation9], 4294963200  ;;  %vm95_vm0 = vcmask 261120   ;;  %v87_v0 = vld [vmem:[#allocation5 + $0x18] sm:$0xff]  ;;  %v86_v1 = vld [vmem:[#allocation5 + $0x10] sm:$0xff]  ;;  %v624_v38 = vmov 0.0  }
  0x35   :  { %487 = vmatprep.subr.mxu0 %v87_v0  ;;  %v85_v2 = vld [vmem:[#allocation5 + $0x8] sm:$0xff]  ;;  %v82_v3 = vld [vmem:[#allocation2] sm:$0xff]  ;;  %v210_v4 = vld [vmem:[#allocation7 + $0xf8] sm:$0xff]  ;;  %287 = vmatprep.mubr.f32.mxu1 %v624_v38  ;;  %s625_s25 = smov [#allocation10]  }
  0x36   :  { %488 = vmatpush3.msra.mxu0 %v87_v0  ;;  %495 = vmatprep.mubr.msk.f32.mxu0 %vm95_vm0, %v82_v3  ;;  %v209_v5 = vld [vmem:[#allocation7 + $0xf0] sm:$0xff]  ;;  %v208_v6 = vld [vmem:[#allocation7 + $0xe8] sm:$0xff]  ;;  %v207_v7 = vld [vmem:[#allocation7 + $0xe0] sm:$0xff]  ;;  %s425_s26 = sshll.u32 %s625_s25, 4  ;;  %s426_s26 = int_to_ptr.vmem [resolvable:$true] %s425_s26 }
  0x37   :  { %489 = vmatprep.subr.mxu0 %v86_v1  ;;  %223 = vmatprep.subr.mxu1 %v210_v4  ;;  %v84_v8 = vld [vmem:[#allocation5] sm:$0xff]  ;;  %v206_v9 = vld [vmem:[#allocation7 + $0xd8] sm:$0xff]  ;;  %v205_v10 = vld [vmem:[#allocation7 + $0xd0] sm:$0xff]  ;;  %s588_s27 = scalar_lea.vmem %s426_s26, 256  ;;  %p593_p7 = scmp.lt.s32.totalorder %s426_s26, %s426_s26 }
  0x38   :  { %490 = vmatpush3.msra.mxu0 %v86_v1  ;;  %224 = vmatpush1.msra.mxu1 %v209_v5  ;;  %v83_v11 = vld [vmem:[#allocation2 + $0x8] sm:$0xff]  ;;  %v204_v12 = vld [vmem:[#allocation7 + $0xc8] sm:$0xff]  ;;  %v203_v13 = vld [vmem:[#allocation7 + $0xc0] sm:$0xff]  ;;  %p589_p6 = scmp.ne.s32.totalorder %s426_s26, %s588_s27  ;;  %p594_p8 = scmp.lt.s32.totalorder %s588_s27, %s588_s27 }
  0x39   :  { %491 = vmatprep.subr.mxu0 %v85_v2  ;;  %225 = vmatprep.subr.mxu1 %v208_v6  ;;  %v202_v14 = vld [vmem:[#allocation7 + $0xb8] sm:$0xff]  ;;  %v201_v15 = vld [vmem:[#allocation7 + $0xb0] sm:$0xff]  ;;  %v200_v16 = vld [vmem:[#allocation7 + $0xa8] sm:$0xff] }
  0x3a   :  { %492 = vmatpush3.msra.mxu0 %v85_v2  ;;  %226 = vmatpush1.msra.mxu1 %v207_v7  ;;  %v199_v17 = vld [vmem:[#allocation7 + $0xa0] sm:$0xff]  ;;  %v198_v18 = vld [vmem:[#allocation7 + $0x98] sm:$0xff]  ;;  %v197_v19 = vld [vmem:[#allocation7 + $0x90] sm:$0xff]  ;;  %p595_p9 = por %p594_p8, %p593_p7 }
  0x3b   :  { %493 = vmatprep.subr.mxu0 %v84_v8  ;;  %227 = vmatprep.subr.mxu1 %v206_v9  ;;  %v196_v20 = vld [vmem:[#allocation7 + $0x88] sm:$0xff]  ;;  %v195_v21 = vld [vmem:[#allocation7 + $0x80] sm:$0xff]  ;;  %v194_v22 = vld [vmem:[#allocation7 + $0x78] sm:$0xff] }
  0x3c   :  { %494 = vmatpush3.msra.mxu0 %v84_v8  ;;  %228 = vmatpush1.msra.mxu1 %v205_v10  ;;  %v193_v23 = vld [vmem:[#allocation7 + $0x70] sm:$0xff]  ;;  %v192_v24 = vld [vmem:[#allocation7 + $0x68] sm:$0xff]  ;;  %v191_v25 = vld [vmem:[#allocation7 + $0x60] sm:$0xff]  ;;  %p596_p10 = pnand %p595_p9, %p589_p6 }
  0x3d   :  { %496 = vmatmul.mubr.msk.f32.vlgmr.msra.gmra.mxu0 %vm95_vm0, %v83_v11  ;;  %229 = vmatprep.subr.mxu1 %v204_v12  ;;  %v190_v26 = vld [vmem:[#allocation7 + $0x58] sm:$0xff]  ;;  %v189_v27 = vld [vmem:[#allocation7 + $0x50] sm:$0xff]  ;;  %v188_v28 = vld [vmem:[#allocation7 + $0x48] sm:$0xff] }
  0x3e   :  { %230 = vmatpush1.msra.mxu1 %v203_v13  ;;  %v187_v29 = vld [vmem:[#allocation7 + $0x40] sm:$0xff]  ;;  %v186_v30 = vld [vmem:[#allocation7 + $0x38] sm:$0xff]  ;;  %v185_v31 = vld [vmem:[#allocation7 + $0x30] sm:$0xff] }
  0x3f   :  { %231 = vmatprep.subr.mxu1 %v202_v14  ;;  %v184_v32 = vld [vmem:[#allocation7 + $0x28] sm:$0xff]  ;;  %v183_v33 = vld [vmem:[#allocation7 + $0x20] sm:$0xff]  ;;  %v182_v34 = vld [vmem:[#allocation7 + $0x18] sm:$0xff]  ;;  %v213_v14 = vlaneseq }
  0x40   :  { %232 = vmatpush1.msra.mxu1 %v201_v15  ;;  %v181_v35 = vld [vmem:[#allocation7 + $0x10] sm:$0xff]  ;;  %v180_v36 = vld [vmem:[#allocation7 + $0x8] sm:$0xff]  ;;  %v179_v37 = vld [vmem:[#allocation7] sm:$0xff] }
  0x41   :  { %233 = vmatprep.subr.mxu1 %v200_v16  ;;  %v335_v39 = vld [vmem:[#allocation8 + $0xf8] sm:$0xff]  ;;  %v334_v41 = vld [vmem:[#allocation8 + $0xf0] sm:$0xff]  ;;  %v333_v43 = vld [vmem:[#allocation8 + $0xe8] sm:$0xff]  ;;  %v214_v15 = vshrl.u32 %v213_v14, 7 }
  0x42   :  { %234 = vmatpush1.msra.mxu1 %v199_v17  ;;  %v319_v40 = vld [vmem:[#allocation8 + $0x78] sm:$0xff]  ;;  %449 = vmatprep.subr.mxu0 %v335_v39  ;;  %v318_v42 = vld [vmem:[#allocation8 + $0x70] sm:$0xff]  ;;  %v317_v44 = vld [vmem:[#allocation8 + $0x68] sm:$0xff] }
  0x43   :  { %235 = vmatprep.subr.mxu1 %v198_v18  ;;  %450 = vmatpush3.msra.mxu0 %v319_v40  ;;  %v332_v45 = vld [vmem:[#allocation8 + $0xe0] sm:$0xff]  ;;  %v331_v47 = vld [vmem:[#allocation8 + $0xd8] sm:$0xff]  ;;  %v330_v49 = vld [vmem:[#allocation8 + $0xd0] sm:$0xff]  ;;  %v215_v16 = vsub.s32 0, %v214_v15  ;;  %v219_v18 = vsub.s32 1, %v214_v15 }
  0x44   :  { %236 = vmatpush1.msra.mxu1 %v197_v19  ;;  %451 = vmatprep.subr.mxu0 %v334_v41  ;;  %v316_v46 = vld [vmem:[#allocation8 + $0x60] sm:$0xff]  ;;  %v315_v48 = vld [vmem:[#allocation8 + $0x58] sm:$0xff]  ;;  %v314_v50 = vld [vmem:[#allocation8 + $0x50] sm:$0xff] }
  0x45   :  { %237 = vmatprep.subr.mxu1 %v196_v20  ;;  %452 = vmatpush3.msra.mxu0 %v318_v42  ;;  %v329_v51 = vld [vmem:[#allocation8 + $0xc8] sm:$0xff]  ;;  %v328_v53 = vld [vmem:[#allocation8 + $0xc0] sm:$0xff]  ;;  %v327_v55 = vld [vmem:[#allocation8 + $0xb8] sm:$0xff] }
  0x46   :  { %238 = vmatpush1.msra.mxu1 %v195_v21  ;;  %453 = vmatprep.subr.mxu0 %v333_v43  ;;  %v313_v52 = vld [vmem:[#allocation8 + $0x48] sm:$0xff]  ;;  %v312_v54 = vld [vmem:[#allocation8 + $0x40] sm:$0xff]  ;;  %v311_v56 = vld [vmem:[#allocation8 + $0x38] sm:$0xff] }
  0x47   :  { %239 = vmatprep.subr.mxu1 %v194_v22  ;;  %454 = vmatpush3.msra.mxu0 %v317_v44  ;;  %v326_v57 = vld [vmem:[#allocation8 + $0xb0] sm:$0xff]  ;;  %v325_v59 = vld [vmem:[#allocation8 + $0xa8] sm:$0xff]  ;;  %v324_v61 = vld [vmem:[#allocation8 + $0xa0] sm:$0xff] }
  0x48   :  { %240 = vmatpush1.msra.mxu1 %v193_v23  ;;  %455 = vmatprep.subr.mxu0 %v332_v45  ;;  %v310_v58 = vld [vmem:[#allocation8 + $0x30] sm:$0xff]  ;;  %v309_v60 = vld [vmem:[#allocation8 + $0x28] sm:$0xff]  ;;  %v308_v62 = vld [vmem:[#allocation8 + $0x20] sm:$0xff] }
  0x49   :  { %241 = vmatprep.subr.mxu1 %v192_v24  ;;  %456 = vmatpush3.msra.mxu0 %v316_v46  ;;  %v439_v0 = vld [vmem:[%s706_s2] ss:$0 sm:$0xff]  ;;  %v323_v6 = vld [vmem:[#allocation8 + $0x98] sm:$0xff]  ;;  %v321_v10 = vld [vmem:[#allocation8 + $0x88] sm:$0xff] }
  0x4a   :  { %242 = vmatpush1.msra.mxu1 %v191_v25  ;;  %457 = vmatprep.subr.mxu0 %v331_v47  ;;  %v307_v7 = vld [vmem:[#allocation8 + $0x18] sm:$0xff]  ;;  %v322_v8 = vld [vmem:[#allocation8 + $0x90] sm:$0xff]  ;;  %v305_v11 = vld [vmem:[#allocation8 + $0x8] sm:$0xff] }
  0x4b   :  { %243 = vmatprep.subr.mxu1 %v190_v26  ;;  %458 = vmatpush3.msra.mxu0 %v315_v48  ;;  %v306_v9 = vld [vmem:[#allocation8 + $0x10] sm:$0xff]  ;;  %v320_v12 = vld [vmem:[#allocation8 + $0x80] sm:$0xff] }
  0x4c   :  { %244 = vmatpush1.msra.mxu1 %v189_v27  ;;  %459 = vmatprep.subr.mxu0 %v330_v49  ;;  %v304_v13 = vld [vmem:[#allocation8] sm:$0xff]  ;;  %v211_v17 = vld [vmem:[%s708_s4] sm:$0x3] }
  0x4d   :  { %245 = vmatprep.subr.mxu1 %v188_v28  ;;  %460 = vmatpush3.msra.mxu0 %v314_v50  ;;  %v216_v19 = vrot.slane %v211_v17, %v215_v16  ;;  %v220_v20 = vrot.slane %v211_v17, %v219_v18 }
  0x4e   :  { %246 = vmatpush1.msra.mxu1 %v187_v29  ;;  %461 = vmatprep.subr.mxu0 %v329_v51 }
  0x4f   :  { %247 = vmatprep.subr.mxu1 %v186_v30  ;;  %462 = vmatpush3.msra.mxu0 %v313_v52 }
  0x50   :  { %248 = vmatpush1.msra.mxu1 %v185_v31  ;;  %463 = vmatprep.subr.mxu0 %v328_v53 }
  0x51   :  { %249 = vmatprep.subr.mxu1 %v184_v32  ;;  %464 = vmatpush3.msra.mxu0 %v312_v54 }
  0x52   :  { %250 = vmatpush1.msra.mxu1 %v183_v33  ;;  %465 = vmatprep.subr.mxu0 %v327_v55 }
  0x53   :  { %251 = vmatprep.subr.mxu1 %v182_v34  ;;  %466 = vmatpush3.msra.mxu0 %v311_v56  ;;  %v442_v34 = vld [vmem:[%s710_s6] ss:$0 sm:$0xff] }
  0x54   :  { %252 = vmatpush1.msra.mxu1 %v181_v35  ;;  %467 = vmatprep.subr.mxu0 %v326_v57 }
  0x55   :  { %253 = vmatprep.subr.mxu1 %v180_v36  ;;  %468 = vmatpush3.msra.mxu0 %v310_v58 }
  0x56   :  { %254 = vmatpush1.msra.mxu1 %v179_v37  ;;  %469 = vmatprep.subr.mxu0 %v325_v59 }
  0x57   :  { %470 = vmatpush3.msra.mxu0 %v309_v60 }
  0x58   :  { %471 = vmatprep.subr.mxu0 %v324_v61 }
  0x59   :  { %472 = vmatpush3.msra.mxu0 %v308_v62 }
  0x5a   :  { %473 = vmatprep.subr.mxu0 %v323_v6 }
  0x5b   :  { %474 = vmatpush3.msra.mxu0 %v307_v7 }
  0x5c   :  { %475 = vmatprep.subr.mxu0 %v322_v8 }
  0x5d   :  { %476 = vmatpush3.msra.mxu0 %v306_v9 }
  0x5e   :  { %477 = vmatprep.subr.mxu0 %v321_v10 }
  0x5f   :  { %478 = vmatpush3.msra.mxu0 %v305_v11 }
  0x60   :  { %479 = vmatprep.subr.mxu0 %v320_v12 }
  0x61   :  { %480 = vmatpush3.msra.mxu0 %v304_v13 }
  0xfd   :  { %v497_v63 = vpop.f32.mrf.mxu0 }
  0xfe   :  { %v174_v3 = vadd.f32 %v497_v63, %v439_v0 }
  0xff   :  { %v168_v1 = vpop.f32.mrf.mxu0 }
 0x100   :  { %v169_v2 = vadd.f32 %v439_v0, %v168_v1  ;;  %v178_v5 = vmax.f32 %v174_v3, 0.0 }
 0x102   :  { %v177_v4 = vmax.f32 %v169_v2, 0.0 }
 0x104   :  { %288 = vmatmul.mubr.f32.vlgmr.msra.gmra.mxu1 %v177_v4 }
 0x105   :  { %293 = vmatprep.mubr.f32.mxu1 %v624_v38 }
 0x108   :  { %294 = vmatmul.mubr.f32.gmra.mxu1 %v178_v5 }
 0x1c4   :  { %v289_v21 = vpop.f32.mrf.mxu1 }
 0x1c5   :  { %v290_v22 = vadd.f32 %v289_v21, %v216_v19 }
 0x1c6   :  { %v291_v23 = vpop.f32.mrf.mxu1 }
 0x1c7   :  { %v292_v24 = vadd.f32 %v291_v23, %v220_v20  ;;  %v300_v27 = vmax.f32 %v290_v22, 0.0 }
 0x1c8   :  { %v295_v25 = vpop.f32.mrf.mxu1 }
 0x1c9   :  { %v301_v26 = vmax.f32 %v292_v24, 0.0  ;;  %v296_v28 = vadd.f32 %v295_v25, %v216_v19 }
 0x1ca   :  { %v297_v29 = vpop.f32.mrf.mxu1 }
 0x1cb   :  { %v298_v30 = vadd.f32 %v297_v29, %v220_v20  ;;  %407 = vmatprep.mubr.f32.mxu0 %v301_v26  ;;  %v302_v32 = vmax.f32 %v296_v28, 0.0 }
 0x1cc   :  { %408 = vmatmul.mubr.f32.vlgmr.msra.gmra.mxu0 %v300_v27 }
 0x1cd   :  { %v303_v31 = vmax.f32 %v298_v30, 0.0 }
 0x1cf   :  { %412 = vmatprep.mubr.f32.mxu0 %v303_v31 }
 0x1d0   :  { %413 = vmatmul.mubr.f32.gmra.mxu0 %v302_v32 }
 0x28c   :  { %v481_v33 = vpop.f32.mrf.mxu0 }
 0x28e   :  { %v482_v35 = vpop.f32.mrf.mxu0 }
 0x28f   :  { %v483_v36 = vadd.f32 %v482_v35, %v481_v33 }
 0x290   :  { %v484_v37 = vpop.f32.mrf.mxu0 }
 0x291   :  { %v410_v38 = vadd.f32 %v483_v36, %v442_v34 }
 0x292   :  { %v485_v39 = vpop.f32.mrf.mxu0 }
 0x293   :  { %418 = vst [vmem:[#allocation10] sm:$0xff] %v410_v38  ;;  %v486_v40 = vadd.f32 %v485_v39, %v484_v37 }
 0x295   :  { %v415_v41 = vadd.f32 %v486_v40, %v442_v34 }
 0x297   :  { %419 = vst [vmem:[#allocation10 + $0x8] sm:$0xff] %v415_v41 }
 0x298   :  { %599 = shalt.err (!%p596_p10)
}
 0x299   :  { %431 = dma.vmem_to_hbm [thread:$0]  %s426_s26, 256, %s711_s7, [#allocation4], %s618_s29, %s618_s29, %s619_s30  }
 0x29a   :  { %614 = dma.done.wait [#allocation4], 256  }
 0x29b   :  { %615 = vsyncadd [#allocation4], 4294967040 }
 0x29c   :  { %435 = vsyncpa [#allocation3], 1 }
 0x29d   :  { %436 = vsyncpa [#allocation6], 1 }
 0x29e   :  { %437 = vsyncpa [#allocation9], 1 }
 0x29f   :  { %438 = vsyncpa [#allocation4], 1 }

</bundles_post_ra>
